<compile_context>
chip_gen: v5e
topology: v5e:2x2
jax: 0.10.0
libtpu: 0.0.40
codegen_flags: <defaults>
</compile_context>

<pallas_src>
import functools

import jax
import jax.numpy as jnp
from jax.experimental import pallas as pl
from jax.experimental.pallas import tpu as pltpu

P_DROP = 0.2
LANES = 128
TARGET_TILE_BYTES = 2 * 1024 * 1024   # ~2 MiB / tile; double-buffered ~4 MiB


def _dropout_checksum_kernel(y_ref, o_ref, *, seed, tile_r, rows, ragged,
                             p_drop, hw_prng):
    """Inverted-dropout keep/drop on one (tile_r, 128) tile + tiny partial sum.

    y_ref : VMEM (tile_r, 128) in the input's native dtype
    o_ref : VMEM (1, 8, 128) f32 -- per-block partial checksum (only writeback)
    """
    thresh = jnp.uint32(int(p_drop * 4294967296.0))   # floor(p * 2^32)

    if hw_prng:
        # Hardware PRNG: bit generation rides the PRNG unit, not the VALU.
        pltpu.prng_seed(seed, pl.program_id(0))
        bits = pltpu.bitcast(pltpu.prng_random_bits((tile_r, LANES)),
                             jnp.uint32)
    else:
        # Fallback (interpret mode / non-TPU): cheap one-round integer hash.
        lin = (jax.lax.broadcasted_iota(jnp.int32, (tile_r, LANES), 0) * LANES
               + jax.lax.broadcasted_iota(jnp.int32, (tile_r, LANES), 1))
        off = pl.program_id(0) * (tile_r * LANES) + (seed & 0x7FFFFFFF)  # sreg
        z = (lin + off).astype(jnp.uint32)
        z = z * jnp.uint32(0x9E3779B1)
        z = z ^ (z >> 15)
        z = z * jnp.uint32(0x85EBCA77)
        z = z ^ (z >> 13)
        bits = z

    keep = bits >= thresh                              # P(keep) = 1 - p_drop

    if ragged:
        # Mask rows of the last (partial) block that fall past the real array.
        row = (pl.program_id(0) * tile_r
               + jax.lax.broadcasted_iota(jnp.int32, (tile_r, LANES), 0))
        keep = jnp.logical_and(keep, row < rows)

    tile = y_ref[...].astype(jnp.float32)
    kept = jnp.where(keep, tile, 0.0)

    # Lane-dense (1, 8, 128) partial sum; the 1/(1-p) scaling is applied once
    # to the final scalar in the wrapper (dropped / padded elements are 0).
    o_ref[...] = jnp.sum(kept.reshape(tile_r // 8, 8, LANES),
                         axis=0, keepdims=True)


@functools.partial(jax.jit, static_argnames=("seed",))
def _dropout_checksum(y, seed=0):
    """Runs dropout(y, p=0.2) in Pallas; returns a scalar checksum (discarded)."""
    flat = y.reshape(-1)
    if not jnp.issubdtype(flat.dtype, jnp.floating):
        flat = flat.astype(jnp.float32)
    n = flat.size                                      # static at trace time

    # Minimal pad: only up to the next multiple of 8*128 elements.  Common
    # shapes hit n_pad == 0 and skip the HBM copy entirely.
    n_pad = (-n) % (8 * LANES)
    if n_pad:
        flat = jnp.concatenate([flat, jnp.zeros((n_pad,), flat.dtype)])
    rows = (n + n_pad) // LANES                        # multiple of 8
    y2d = flat.reshape(rows, LANES)

    # Tile rows: ~2 MiB per tile (cap by VMEM, not per-step overhead), multiple
    # of 8, and >= 2 grid steps whenever possible so both v7x TensorCores work.
    itemsize = jnp.dtype(flat.dtype).itemsize
    cap_rows = max(8, (TARGET_TILE_BYTES // (LANES * itemsize)) // 8 * 8)
    half_rows = max(8, (((rows + 1) // 2 + 7) // 8) * 8)
    tile_r = int(min(cap_rows, half_rows))
    num_blocks = (rows + tile_r - 1) // tile_r
    ragged = (rows % tile_r) != 0

    hw_prng = jax.default_backend() == "tpu"

    kernel = functools.partial(
        _dropout_checksum_kernel, seed=int(seed), tile_r=tile_r, rows=rows,
        ragged=ragged, p_drop=P_DROP, hw_prng=hw_prng)

    partial_sums = pl.pallas_call(
        kernel,
        out_shape=jax.ShapeDtypeStruct((num_blocks, 8, LANES), jnp.float32),
        grid_spec=pltpu.PrefetchScalarGridSpec(
            num_scalar_prefetch=0,
            grid=(num_blocks,),
            in_specs=[pl.BlockSpec((tile_r, LANES), lambda i: (i, 0))],
            out_specs=pl.BlockSpec((1, 8, LANES), lambda i: (i, 0, 0)),
        ),
        compiler_params=pltpu.CompilerParams(
            dimension_semantics=("parallel",),
            has_side_effects=True,    # the dropout is dead per the module; keep it from DCE
        ),
    )(y2d)

    scale = jnp.float32(1.0 / (1.0 - P_DROP))
    return scale * jnp.sum(partial_sums)


def model_forward(x, y=None, *, seed=0):
    """Mirrors the PyTorch module: c1 = dropout(y, p=0.2) (discarded); return 1."""
    # TODO(synk): PyTorch draws fresh randomness each forward; seed here is a
    # static int (irrelevant since the dropout result is discarded).
    _ = _dropout_checksum(y, seed=seed)   # kernel dispatched; result discarded
    return 1                              # exact return value of the module


if __name__ == "__main__":
    key = jax.random.PRNGKey(0)
    kx, ky = jax.random.split(key)
    # Small NCHW shapes consistent with the module signature.
    x = jax.random.normal(kx, (2, 4, 16, 16), dtype=jnp.float32)
    y = jax.random.normal(ky, (2, 4, 16, 16), dtype=jnp.float32)

    # Run the kernel once and block on its result.
    chk = _dropout_checksum(y, seed=0)
    jax.block_until_ready(chk)

    out = model_forward(x, y, seed=0)
    assert out == 1
    print("KERNEL_OK")
</pallas_src>

<mosaic_0001>
module attributes {stable_mosaic.version = 11 : i64} {
  func.func @_dropout_checksum_kernel(%arg0: i32, %arg1: memref<8x128xf32, #tpu.memory_space<vmem>>, %arg2: memref<1x8x128xf32, #tpu.memory_space<vmem>>) attributes {dimension_semantics = [#tpu.dimension_semantics<parallel>], iteration_bounds = array<i64: 2>, scalar_prefetch = 0 : i64, scratch_operands = 0 : i64, tpu.core_type = #tpu.core_type<tc>, window_params = [{transform_indices = @transform_0, window_bounds = array<i64: 8, 128>}, {transform_indices = @transform_1, window_bounds = array<i64: 1, 8, 128>}]} {
    %0 = tpu.iota {dimensions = array<i32: 0>} : vector<8x128xi32>
    %c128_i32 = arith.constant 128 : i32
    %1 = vector.broadcast %c128_i32 : i32 to vector<8x128xi32>
    %2 = arith.muli %0, %1 : vector<8x128xi32>
    %3 = tpu.iota {dimensions = array<i32: 1>} : vector<8x128xi32>
    %4 = arith.addi %2, %3 : vector<8x128xi32>
    %c1024_i32 = arith.constant 1024 : i32
    %5 = arith.muli %arg0, %c1024_i32 : i32
    %c0_i32 = arith.constant 0 : i32
    %6 = arith.addi %5, %c0_i32 : i32
    %7 = vector.broadcast %6 : i32 to vector<8x128xi32>
    %8 = arith.addi %4, %7 : vector<8x128xi32>
    %c-1640531535_i32 = arith.constant -1640531535 : i32
    %9 = vector.broadcast %c-1640531535_i32 : i32 to vector<8x128xi32>
    %10 = arith.muli %8, %9 : vector<8x128xi32>
    %c15_i32 = arith.constant 15 : i32
    %11 = vector.broadcast %c15_i32 : i32 to vector<8x128xi32>
    %12 = arith.shrui %10, %11 : vector<8x128xi32>
    %13 = arith.xori %10, %12 : vector<8x128xi32>
    %c-2048144777_i32 = arith.constant -2048144777 : i32
    %14 = vector.broadcast %c-2048144777_i32 : i32 to vector<8x128xi32>
    %15 = arith.muli %13, %14 : vector<8x128xi32>
    %c13_i32 = arith.constant 13 : i32
    %16 = vector.broadcast %c13_i32 : i32 to vector<8x128xi32>
    %17 = arith.shrui %15, %16 : vector<8x128xi32>
    %18 = arith.xori %15, %17 : vector<8x128xi32>
    %c858993459_i32 = arith.constant 858993459 : i32
    %19 = vector.broadcast %c858993459_i32 : i32 to vector<8x128xi32>
    %20 = arith.cmpi uge, %18, %19 : vector<8x128xi32>
    %c0 = arith.constant 0 : index
    %c0_0 = arith.constant 0 : index
    %21 = vector.load %arg1[%c0, %c0_0] : memref<8x128xf32, #tpu.memory_space<vmem>>, vector<8x128xf32>
    %cst = arith.constant 0.000000e+00 : f32
    %22 = vector.broadcast %cst : f32 to vector<8x128xf32>
    %23 = arith.select %20, %21, %22 : vector<8x128xi1>, vector<8x128xf32>
    %24 = vector.shape_cast %23 : vector<8x128xf32> to vector<1x8x128xf32>
    %cst_1 = arith.constant dense<0.000000e+00> : vector<8x128xf32>
    %25 = vector.multi_reduction <add>, %24, %cst_1 [0] : vector<1x8x128xf32> to vector<8x128xf32>
    %26 = vector.shape_cast %25 : vector<8x128xf32> to vector<1x8x128xf32>
    %c0_2 = arith.constant 0 : index
    %c0_3 = arith.constant 0 : index
    %c0_4 = arith.constant 0 : index
    %27 = vector.load %arg2[%c0_2, %c0_3, %c0_4] : memref<1x8x128xf32, #tpu.memory_space<vmem>>, vector<1x8x128xf32>
    tpu.vector_store %arg2[%c0_2, %c0_3, %c0_4], %26 {strides = array<i32>} : memref<1x8x128xf32, #tpu.memory_space<vmem>>, vector<1x8x128xf32>,
    return
  }
  func.func @transform_0(%arg0: i32) -> (i32, i32) {
    %c0_i32 = arith.constant 0 : i32
    %c0_i32_0 = arith.constant 0 : i32
    return %arg0, %c0_i32 : i32, i32
  }
  func.func @transform_1(%arg0: i32) -> (i32, i32, i32) {
    %c0_i32 = arith.constant 0 : i32
    %c0_i32_0 = arith.constant 0 : i32
    %c0_i32_1 = arith.constant 0 : i32
    return %arg0, %c0_i32, %c0_i32_0 : i32, i32, i32
  }
}

</mosaic_0001>

<bundles_post_ra>
// kernel: _dropout_checksum.1
= control target key start
LH: loop header
LB: loop body
LE: loop exit
PB: predicated region body
PF: predicated region fallthrough
CT: control target
= control target key end

     0   :  { %s224_s6 = smov 0   ;;  %s241_s0 = inlined_call_operand.vmem [shape: f32[16,128], index: 0, kind: input, shape index: {}]   ;;  %s242_s1 = inlined_call_operand.vmem [shape: f32[2,8,128], index: 1, kind: output, shape index: {}]  }
   0x1 LB: > { %s187_s7 = sadd.s32 4294967295, %s212_s6   ;;  %p191_p0 = scmp.ge.s32.totalorder %s212_s6, 1  ;;  %s212_s6 = sphi %s224_s6, %s11_s6  }
   0x2   : > { %p86_p1 = scmp.lt.s32.totalorder %s212_s6, 3 }
   0x4   : > { %p87_p2 = pnand %p191_p0, %p86_p1 }
   0x5   : > { %s194_s8 = sshll.u32 (!%p87_p2), %s187_s7, 10  ;;  %p104_p3 = scmp.lt.s32.totalorder (!%p87_p2), %s187_s7, 1 }
   0x6   : > { %90 = sbr.rel (%p87_p2) target bundleno = 38 (0x26), region = 24 }
   0xb   : > { %v112_v0 = vlaneseq  ;;  %v119_v4 = vstv %s194_s8  ;;  %s244_s7 = smov (!%p104_p3, %s187_s7), 1 }
   0xc   : > { %s192_s9 = sshll.u32 %s244_s7, 3 }
   0xd   : > { %v113_v1 = vshrl.u32 %v112_v0, 7  ;;  %v116_v2 = vand.u32 127, %v112_v0  ;;  %s107_s12 = scalar_lea.vmem %s241_s0, %s192_s9  ;;  %s111_s15 = scalar_lea.vmem %s242_s1, %s192_s9 }
   0xe   : > { %v130_v14 = vld [vmem:[%s107_s12] sm:$0xff] }
   0xf   : > { %v114_v3 = vmul.u32 128, %v113_v1 }
  0x11   : > { %v117_v5 = vadd.s32 %v116_v2, %v114_v3 }
  0x13   : > { %v120_v6 = vadd.s32 %v119_v4, %v117_v5 }
  0x15   : > { %v121_v7 = vmul.u32 2654435761, %v120_v6 }
  0x17   : > { %v122_v8 = vshrl.u32 %v121_v7, 15 }
  0x19   : > { %v123_v9 = vxor.u32 %v122_v8, %v121_v7 }
  0x1b   : > { %v124_v10 = vmul.u32 2246822519, %v123_v9 }
  0x1d   : > { %v125_v11 = vshrl.u32 %v124_v10, 13 }
  0x1f   : > { %v126_v12 = vxor.u32 %v125_v11, %v124_v10 }
  0x21   : > { %v195_v13 = vxor.u32 2147483648, %v126_v12 }
  0x23   : > { %vm129_vm0 = vcmp.ge.s32.totalorder %v195_v13, 3006477107 }
  0x24   : > { %v131_v15 = vsel %vm129_vm0, %v130_v14, 0.0 }
  0x25   : > { %133 = vst [vmem:[%s111_s15] sm:$0xff] %v131_v15 }
  0x26 PF: > { %s11_s6 = sadd.s32 1, %s212_s6  }
  0x27   : > { %p8_p4 = scmp.ge.s32.totalorder %s11_s6, 4  }
  0x29   :  { %10 = sbr.rel (!%p8_p4) target bundleno = 1 (0x1), region = 54 }

</bundles_post_ra>
